<compile_context>
chip_gen: v5e
topology: v5e:2x2
jax: 0.10.0
libtpu: 0.0.40
codegen_flags: <defaults>
</compile_context>

<pallas_src>
import functools

import jax
import jax.numpy as jnp
from jax import lax
from jax.experimental import pallas as pl
from jax.experimental.pallas import tpu as pltpu

EPS = 1e-5
K = 7            # Conv1d kernel size
PAD = K // 2     # "same" padding = 3


# --------------------------------------------------------------------------- helpers
def _sublane_granule(dtype):
    # second-minor packing granule: 8 rows for 4-byte dtypes, 16 for 2-byte dtypes
    return {4: 8, 2: 16, 1: 32}[jnp.dtype(dtype).itemsize]


def _round_up(x, m):
    return ((x + m - 1) // m) * m


def _vmem_limit_bytes():
    """Generation-dependent VMEM cap: ~80% of physical, capped at 100 MiB
    (v5e/v6e: 128 MiB physical -> 100 MiB; v7x: 64 MiB physical -> ~51 MiB)."""
    cap = 64 * 1024 * 1024
    try:
        info = pltpu.get_tpu_info()
        cap = int(getattr(info, "vmem_capacity_bytes", cap))
    except Exception:
        pass
    return int(min(int(cap * 0.8), 100 * 1024 * 1024))


def _choose_batch_tile(n, length, cin, cout, compute_dtype, store_dtype, budget):
    """Largest batch tile (divisor of n) whose per-step footprint fits the budget and
    whose lane block stays 128-aligned whenever the batch axis is actually tiled."""
    cb = jnp.dtype(compute_dtype).itemsize
    sb = jnp.dtype(store_dtype).itemsize
    granule = _sublane_granule(compute_dtype)
    r_pad = _round_up(K * max(cin, cout), granule)
    best = None
    for b in range(1, n + 1):
        if n % b:
            continue
        if (n // b) > 1 and (b * length) % 128 != 0:
            continue                      # keep lane blocks 128-aligned when tiling
        if b > 32 or b * length > 8192:
            continue                      # bound trace size / per-step VMEM
        per_step = b * length * (2 * max(cin, cout) * cb    # input double buffer
                                 + 2 * cout * sb            # output double buffer
                                 + r_pad * cb               # im2col scratch
                                 + 6 * cout * 4)            # f32 working values
        if per_step <= budget:
            best = b
    if best is None:
        best = 1 if (length % 128 == 0 or n == 1) else n
    return best, n // best


# --------------------------------------------------------------------------- kernels
def _make_conv_kernel(cin, r_pad, length, btile, apply_pre_bn, compute_dtype):
    """Conv1d(k=7, p=3, no bias) on B_tile segments in (C, B_tile*L) layout via one
    im2col MXU matmul.  Optionally fuses the previous layer's BatchNorm+ReLU
    (folded scale/shift) onto the input, and emits per-step BN partial statistics
    (sum, centered M2) of the conv output computed on the f32 accumulator."""
    r_rows = K * cin
    inv_count = 1.0 / float(btile * length)

    def kernel(*refs):
        if apply_pre_bn:
            x_ref, scale_ref, shift_ref, w_ref, y_ref, stats_ref, cols_ref = refs
        else:
            x_ref, w_ref, y_ref, stats_ref, cols_ref = refs

        # --- invariant zero fills, hoisted to the first grid step.  The scratch
        #     persists across steps and the grid axis is "arbitrary" (sequential on
        #     one TensorCore), so step 0 is guaranteed to initialize this instance.
        @pl.when(pl.program_id(0) == 0)
        def _init_invariant_zeros():
            if r_pad > r_rows:            # contraction tail rows (0 * garbage = NaN!)
                cols_ref[r_rows:r_pad, :] = jnp.zeros(
                    (r_pad - r_rows, btile * length), compute_dtype)
            for k in range(K):            # per-segment "same"-padding edge strips
                s = k - PAD
                if s == 0:
                    continue
                r0 = k * cin
                for b in range(btile):
                    lo = b * length
                    if s < 0:
                        cols_ref[r0:r0 + cin, lo:lo + (-s)] = jnp.zeros(
                            (cin, -s), compute_dtype)
                    else:
                        cols_ref[r0:r0 + cin, lo + length - s:lo + length] = jnp.zeros(
                            (cin, s), compute_dtype)

        # --- fused previous-layer BatchNorm+ReLU (folded scale/shift): one FMA + max
        if apply_pre_bn:
            xin = x_ref[...].astype(jnp.float32)
            xin = jnp.maximum(xin * scale_ref[...] + shift_ref[...], 0.0)
            xc = xin.astype(compute_dtype)
        else:
            xc = x_ref[...].astype(compute_dtype)

        # --- im2col hot loop: only the moving data slabs are stored each step
        for k in range(K):
            s = k - PAD
            r0 = k * cin
            for b in range(btile):
                lo = b * length
                if s < 0:
                    cols_ref[r0:r0 + cin, lo + (-s):lo + length] = xc[:, lo:lo + length + s]
                elif s > 0:
                    cols_ref[r0:r0 + cin, lo:lo + length - s] = xc[:, lo + s:lo + length]
                else:
                    cols_ref[r0:r0 + cin, lo:lo + length] = xc[:, lo:lo + length]

        # --- one MXU matmul (compute_dtype operands), f32 accumulation
        y = jnp.dot(w_ref[...], cols_ref[...],
                    preferred_element_type=jnp.float32)          # (cout, B_tile*L)

        y_ref[...] = y.astype(y_ref.dtype)

        # --- per-step BatchNorm partial statistics (f32), single (cout, 2) store
        ssum = jnp.sum(y, axis=1, keepdims=True)
        mu = ssum * inv_count
        d = y - mu
        m2 = jnp.sum(d * d, axis=1, keepdims=True)
        stats_ref[...] = jnp.concatenate([ssum, m2], axis=1)

    return kernel


def _bn_relu_kernel(y_ref, scale_ref, shift_ref, o_ref):
    """Final BatchNorm+ReLU: y * scale + shift (folded), then max(., 0)."""
    y = y_ref[...].astype(jnp.float32)
    o_ref[...] = jnp.maximum(y * scale_ref[...] + shift_ref[...], 0.0).astype(o_ref.dtype)


# --------------------------------------------------------------------------- wrapper
def _pack_weight(w, r_pad, dtype):
    """(Cout, Cin, K) torch-layout weight -> (Cout, r_pad) with row = k*Cin + c,
    matching the im2col row ordering; tail columns are zero padding."""
    cout, cin, kk = w.shape
    w_rows = jnp.transpose(w, (0, 2, 1)).reshape(cout, kk * cin).astype(jnp.float32)
    pad = r_pad - kk * cin
    if pad:
        w_rows = jnp.pad(w_rows, ((0, 0), (0, pad)))
    return w_rows.astype(dtype)


def _combine_stats(stats, count_per_step):
    """Combine per-step (sum, M2) into per-channel mean / biased variance (Chan)."""
    n_steps = stats.shape[0]
    total = n_steps * count_per_step
    step_sum = stats[:, :, 0]                                    # (T, Cout)
    step_m2 = stats[:, :, 1]                                     # (T, Cout)
    mean = jnp.sum(step_sum, axis=0) / total
    step_mean = step_sum / count_per_step
    m2 = jnp.sum(step_m2, axis=0) + count_per_step * jnp.sum(
        (step_mean - mean[None, :]) ** 2, axis=0)
    var = jnp.maximum(m2 / total, 0.0)                           # biased variance
    return mean, var


def _fold_bn(mean, var, gamma, beta):
    scale = gamma * lax.rsqrt(var + EPS)
    shift = beta - mean * scale
    return (scale.reshape(-1, 1).astype(jnp.float32),
            shift.reshape(-1, 1).astype(jnp.float32))


def _conv_layer(x2d, w_flat, cin, r_pad, cout, length, btile, n_tiles, cp,
                scale=None, shift=None, compute_dtype=jnp.bfloat16,
                store_dtype=jnp.bfloat16):
    """One tiled conv pass over (cin, N*L): returns (conv output, per-step stats)."""
    total = btile * length
    apply_pre_bn = scale is not None
    kernel = _make_conv_kernel(cin, r_pad, length, btile, apply_pre_bn, compute_dtype)

    in_specs = [pl.BlockSpec((cin, total), lambda i: (0, i))]
    args = [x2d]
    if apply_pre_bn:
        sspec = pl.BlockSpec((cin, 1), lambda i: (0, 0))
        in_specs += [sspec, sspec]
        args += [scale, shift]
    in_specs.append(pl.BlockSpec(w_flat.shape, lambda i: (0, 0)))
    args.append(w_flat)

    y, stats = pl.pallas_call(
        kernel,
        grid=(n_tiles,),
        in_specs=in_specs,
        out_specs=[pl.BlockSpec((cout, total), lambda i: (0, i)),
                   pl.BlockSpec((None, cout, 2), lambda i: (i, 0, 0))],
        out_shape=[jax.ShapeDtypeStruct((cout, n_tiles * total), store_dtype),
                   jax.ShapeDtypeStruct((n_tiles, cout, 2), jnp.float32)],
        scratch_shapes=[pltpu.VMEM((r_pad, total), compute_dtype)],
        compiler_params=cp,
    )(*args)
    return y, stats


def double_conv_pallas(x, params, *, compute_dtype=jnp.bfloat16):
    """x: (N, C_in, L) float32 -> (N, C_out, L) float32.  Train-mode BatchNorm."""
    n, cin, length = x.shape
    w1, g1, b1, w2, g2, b2 = params
    cout = w1.shape[0]
    assert length >= 4, "segment length must be >= 4 for kernel_size=7 taps"

    store_dtype = compute_dtype                   # bf16 intermediates on the fast path
    granule = _sublane_granule(compute_dtype)
    r1_pad = _round_up(K * cin, granule)
    r2_pad = _round_up(K * cout, granule)

    vmem_limit = _vmem_limit_bytes()
    cp = pltpu.CompilerParams(dimension_semantics=("arbitrary",),
                              vmem_limit_bytes=vmem_limit)
    btile, n_tiles = _choose_batch_tile(n, length, cin, cout, compute_dtype,
                                        store_dtype, vmem_limit // 3)

    w1_flat = _pack_weight(w1, r1_pad, compute_dtype)            # (Cout, K*Cin  pad)
    w2_flat = _pack_weight(w2, r2_pad, compute_dtype)            # (Cout, K*Cout pad)

    # (N, C, L) -> lane-dense (C, N*L) layout; cast once to the compute dtype.
    x2d = jnp.transpose(x, (1, 0, 2)).reshape(cin, n * length).astype(compute_dtype)

    # layer 1: conv1 + per-step BN stats
    y1, stats1 = _conv_layer(x2d, w1_flat, cin, r1_pad, cout, length, btile, n_tiles, cp,
                             compute_dtype=compute_dtype, store_dtype=store_dtype)
    mean1, var1 = _combine_stats(stats1, btile * length)
    scale1, shift1 = _fold_bn(mean1, var1, g1, b1)

    # layer 2: fused BN1+ReLU on input, conv2 + per-step BN stats
    y2, stats2 = _conv_layer(y1, w2_flat, cout, r2_pad, cout, length, btile, n_tiles, cp,
                             scale=scale1, shift=shift1,
                             compute_dtype=compute_dtype, store_dtype=store_dtype)
    mean2, var2 = _combine_stats(stats2, btile * length)
    scale2, shift2 = _fold_bn(mean2, var2, g2, b2)

    # final BN2 + ReLU (lane-dense blocks)
    total = btile * length
    out2d = pl.pallas_call(
        _bn_relu_kernel,
        grid=(n_tiles,),
        in_specs=[pl.BlockSpec((cout, total), lambda i: (0, i)),
                  pl.BlockSpec((cout, 1), lambda i: (0, 0)),
                  pl.BlockSpec((cout, 1), lambda i: (0, 0))],
        out_specs=pl.BlockSpec((cout, total), lambda i: (0, i)),
        out_shape=jax.ShapeDtypeStruct((cout, n * length), x.dtype),
        compiler_params=cp,
    )(y2, scale2, shift2)

    # (C, N*L) -> (N, C, L) (layout plumbing only)
    return jnp.transpose(out2d.reshape(cout, n, length), (1, 0, 2))


# --------------------------------------------------------------------------- params / reference
def init_params(key, in_channels, out_channels):
    """PyTorch-style init.  Conv biases are omitted: with train-mode BatchNorm right
    after each conv, a per-channel constant bias is exactly cancelled by the mean
    subtraction, so it has no effect on the forward output (dead work)."""
    k1, k2 = jax.random.split(key)
    bound1 = 1.0 / jnp.sqrt(in_channels * K)
    bound2 = 1.0 / jnp.sqrt(out_channels * K)
    w1 = jax.random.uniform(k1, (out_channels, in_channels, K), jnp.float32, -bound1, bound1)
    w2 = jax.random.uniform(k2, (out_channels, out_channels, K), jnp.float32, -bound2, bound2)
    g1 = jnp.ones((out_channels,), jnp.float32)
    b1 = jnp.zeros((out_channels,), jnp.float32)
    g2 = jnp.ones((out_channels,), jnp.float32)
    b2 = jnp.zeros((out_channels,), jnp.float32)
    return (w1, g1, b1, w2, g2, b2)


def double_conv_reference(x, params, compute_dtype=jnp.float32):
    """Pure-JAX reference with torch semantics (train-mode BN, biased variance).
    `compute_dtype` rounds the conv operands the same way the kernel's MXU path does
    (bf16 operands, f32 accumulation)."""
    w1, g1, b1, w2, g2, b2 = params

    def conv(h, w):
        hc = h.astype(compute_dtype).astype(jnp.float32)
        wc = w.astype(compute_dtype).astype(jnp.float32)
        return lax.conv_general_dilated(
            hc, wc, window_strides=(1,), padding=[(PAD, PAD)],
            dimension_numbers=("NCH", "OIH", "NCH"),
            precision=lax.Precision.HIGHEST)

    def bn_relu(y, g, b):
        mean = jnp.mean(y, axis=(0, 2), keepdims=True)
        var = jnp.mean((y - mean) ** 2, axis=(0, 2), keepdims=True)   # biased
        yn = (y - mean) / jnp.sqrt(var + EPS)
        yn = yn * g.reshape(1, -1, 1) + b.reshape(1, -1, 1)
        return jnp.maximum(yn, 0.0)

    h = bn_relu(conv(x, w1), g1, b1)
    return bn_relu(conv(h, w2), g2, b2)


if __name__ == "__main__":
    key = jax.random.PRNGKey(0)
    kx, kp = jax.random.split(key)

    N, CIN, COUT, L = 2, 4, 8, 16
    x = jax.random.normal(kx, (N, CIN, L), jnp.float32)
    params = init_params(kp, CIN, COUT)

    # fast path: bf16 MXU operands + bf16 stored intermediates, f32 accumulation /
    # BN statistics (reference rounds the conv operands identically; tolerance
    # accounts for the bf16 intermediate storage rounding)
    fwd_bf16 = jax.jit(functools.partial(double_conv_pallas, compute_dtype=jnp.bfloat16))
    out = jax.block_until_ready(fwd_bf16(x, params))
    assert out.shape == (N, COUT, L)
    ref_bf16 = double_conv_reference(x, params, compute_dtype=jnp.bfloat16)
    assert jnp.allclose(out, ref_bf16, atol=3e-2, rtol=3e-2), \
        float(jnp.max(jnp.abs(out - ref_bf16)))

    # full-f32 path: sanity check against the exact torch-style f32 reference
    # (loose tolerance accounts for MXU f32 multi-pass behaviour)
    fwd_f32 = jax.jit(functools.partial(double_conv_pallas, compute_dtype=jnp.float32))
    out32 = jax.block_until_ready(fwd_f32(x, params))
    ref_f32 = double_conv_reference(x, params, compute_dtype=jnp.float32)
    assert jnp.allclose(out32, ref_f32, atol=2e-2, rtol=2e-2), \
        float(jnp.max(jnp.abs(out32 - ref_f32)))

    print("KERNEL_OK")
</pallas_src>

<mosaic_0001>
module attributes {stable_mosaic.version = 11 : i64} {
  func.func @kernel(%arg0: i32, %arg1: memref<4x32xbf16, #tpu.memory_space<vmem>>, %arg2: memref<8x32xbf16, #tpu.memory_space<vmem>>, %arg3: memref<8x32xbf16, #tpu.memory_space<vmem>>, %arg4: memref<1x8x2xf32, #tpu.memory_space<vmem>>, %arg5: memref<32x32xbf16, #tpu.memory_space<vmem>>) attributes {dimension_semantics = [#tpu.dimension_semantics<arbitrary>], iteration_bounds = array<i64: 1>, scalar_prefetch = 0 : i64, scratch_operands = 1 : i64, tpu.core_type = #tpu.core_type<tc>, window_params = [{transform_indices = @transform_0, window_bounds = array<i64: 4, 32>}, {pipeline_mode = #tpu.pipeline_mode<synchronous>, transform_indices = @transform_1, window_bounds = array<i64: 8, 32>}, {transform_indices = @transform_2, window_bounds = array<i64: 8, 32>}, {transform_indices = @transform_3, window_bounds = array<i64: 1, 8, 2>}]} {
    %c0_i32 = arith.constant 0 : i32
    %0 = arith.cmpi eq, %arg0, %c0_i32 : i32
    %1 = arith.extui %0 : i1 to i32
    %c0_i32_0 = arith.constant 0 : i32
    %2 = arith.cmpi ne, %1, %c0_i32_0 : i32
    scf.if %2 {
      %cst_30 = arith.constant 0.000000e+00 : bf16
      %50 = vector.broadcast %cst_30 : bf16 to vector<4x32xbf16>
      %c28 = arith.constant 28 : index
      %c0_31 = arith.constant 0 : index
      %51 = vector.load %arg5[%c28, %c0_31] : memref<32x32xbf16, #tpu.memory_space<vmem>>, vector<4x32xbf16>
      tpu.vector_store %arg5[%c28, %c0_31], %50 {strides = array<i32>} : memref<32x32xbf16, #tpu.memory_space<vmem>>, vector<4x32xbf16>,
      %cst_32 = arith.constant 0.000000e+00 : bf16
      %52 = vector.broadcast %cst_32 : bf16 to vector<4x3xbf16>
      %c0_33 = arith.constant 0 : index
      %c0_34 = arith.constant 0 : index
      %53 = vector.load %arg5[%c0_33, %c0_34] : memref<32x32xbf16, #tpu.memory_space<vmem>>, vector<4x3xbf16>
      tpu.vector_store %arg5[%c0_33, %c0_34], %52 {strides = array<i32>} : memref<32x32xbf16, #tpu.memory_space<vmem>>, vector<4x3xbf16>,
      %cst_35 = arith.constant 0.000000e+00 : bf16
      %54 = vector.broadcast %cst_35 : bf16 to vector<4x3xbf16>
      %c0_36 = arith.constant 0 : index
      %c16_37 = arith.constant 16 : index
      %55 = vector.load %arg5[%c0_36, %c16_37] : memref<32x32xbf16, #tpu.memory_space<vmem>>, vector<4x3xbf16>
      tpu.vector_store %arg5[%c0_36, %c16_37], %54 {strides = array<i32>} : memref<32x32xbf16, #tpu.memory_space<vmem>>, vector<4x3xbf16>,
      %cst_38 = arith.constant 0.000000e+00 : bf16
      %56 = vector.broadcast %cst_38 : bf16 to vector<4x2xbf16>
      %c4_39 = arith.constant 4 : index
      %c0_40 = arith.constant 0 : index
      %57 = vector.load %arg5[%c4_39, %c0_40] : memref<32x32xbf16, #tpu.memory_space<vmem>>, vector<4x2xbf16>
      tpu.vector_store %arg5[%c4_39, %c0_40], %56 {strides = array<i32>} : memref<32x32xbf16, #tpu.memory_space<vmem>>, vector<4x2xbf16>,
      %cst_41 = arith.constant 0.000000e+00 : bf16
      %58 = vector.broadcast %cst_41 : bf16 to vector<4x2xbf16>
      %c4_42 = arith.constant 4 : index
      %c16_43 = arith.constant 16 : index
      %59 = vector.load %arg5[%c4_42, %c16_43] : memref<32x32xbf16, #tpu.memory_space<vmem>>, vector<4x2xbf16>
      tpu.vector_store %arg5[%c4_42, %c16_43], %58 {strides = array<i32>} : memref<32x32xbf16, #tpu.memory_space<vmem>>, vector<4x2xbf16>,
      %cst_44 = arith.constant 0.000000e+00 : bf16
      %60 = vector.broadcast %cst_44 : bf16 to vector<4x1xbf16>
      %c8_45 = arith.constant 8 : index
      %c0_46 = arith.constant 0 : index
      %61 = vector.load %arg5[%c8_45, %c0_46] : memref<32x32xbf16, #tpu.memory_space<vmem>>, vector<4x1xbf16>
      tpu.vector_store %arg5[%c8_45, %c0_46], %60 {strides = array<i32>} : memref<32x32xbf16, #tpu.memory_space<vmem>>, vector<4x1xbf16>,
      %cst_47 = arith.constant 0.000000e+00 : bf16
      %62 = vector.broadcast %cst_47 : bf16 to vector<4x1xbf16>
      %c8_48 = arith.constant 8 : index
      %c16_49 = arith.constant 16 : index
      %63 = vector.load %arg5[%c8_48, %c16_49] : memref<32x32xbf16, #tpu.memory_space<vmem>>, vector<4x1xbf16>
      tpu.vector_store %arg5[%c8_48, %c16_49], %62 {strides = array<i32>} : memref<32x32xbf16, #tpu.memory_space<vmem>>, vector<4x1xbf16>,
      %cst_50 = arith.constant 0.000000e+00 : bf16
      %64 = vector.broadcast %cst_50 : bf16 to vector<4x1xbf16>
      %c16_51 = arith.constant 16 : index
      %c15 = arith.constant 15 : index
      %65 = vector.load %arg5[%c16_51, %c15] : memref<32x32xbf16, #tpu.memory_space<vmem>>, vector<4x1xbf16>
      tpu.vector_store %arg5[%c16_51, %c15], %64 {strides = array<i32>} : memref<32x32xbf16, #tpu.memory_space<vmem>>, vector<4x1xbf16>,
      %cst_52 = arith.constant 0.000000e+00 : bf16
      %66 = vector.broadcast %cst_52 : bf16 to vector<4x1xbf16>
      %c16_53 = arith.constant 16 : index
      %c31 = arith.constant 31 : index
      %67 = vector.load %arg5[%c16_53, %c31] : memref<32x32xbf16, #tpu.memory_space<vmem>>, vector<4x1xbf16>
      tpu.vector_store %arg5[%c16_53, %c31], %66 {strides = array<i32>} : memref<32x32xbf16, #tpu.memory_space<vmem>>, vector<4x1xbf16>,
      %cst_54 = arith.constant 0.000000e+00 : bf16
      %68 = vector.broadcast %cst_54 : bf16 to vector<4x2xbf16>
      %c20_55 = arith.constant 20 : index
      %c14 = arith.constant 14 : index
      %69 = vector.load %arg5[%c20_55, %c14] : memref<32x32xbf16, #tpu.memory_space<vmem>>, vector<4x2xbf16>
      tpu.vector_store %arg5[%c20_55, %c14], %68 {strides = array<i32>} : memref<32x32xbf16, #tpu.memory_space<vmem>>, vector<4x2xbf16>,
      %cst_56 = arith.constant 0.000000e+00 : bf16
      %70 = vector.broadcast %cst_56 : bf16 to vector<4x2xbf16>
      %c20_57 = arith.constant 20 : index
      %c30 = arith.constant 30 : index
      %71 = vector.load %arg5[%c20_57, %c30] : memref<32x32xbf16, #tpu.memory_space<vmem>>, vector<4x2xbf16>
      tpu.vector_store %arg5[%c20_57, %c30], %70 {strides = array<i32>} : memref<32x32xbf16, #tpu.memory_space<vmem>>, vector<4x2xbf16>,
      %cst_58 = arith.constant 0.000000e+00 : bf16
      %72 = vector.broadcast %cst_58 : bf16 to vector<4x3xbf16>
      %c24_59 = arith.constant 24 : index
      %c13 = arith.constant 13 : index
      %73 = vector.load %arg5[%c24_59, %c13] : memref<32x32xbf16, #tpu.memory_space<vmem>>, vector<4x3xbf16>
      tpu.vector_store %arg5[%c24_59, %c13], %72 {strides = array<i32>} : memref<32x32xbf16, #tpu.memory_space<vmem>>, vector<4x3xbf16>,
      %cst_60 = arith.constant 0.000000e+00 : bf16
      %74 = vector.broadcast %cst_60 : bf16 to vector<4x3xbf16>
      %c24_61 = arith.constant 24 : index
      %c29 = arith.constant 29 : index
      %75 = vector.load %arg5[%c24_61, %c29] : memref<32x32xbf16, #tpu.memory_space<vmem>>, vector<4x3xbf16>
      tpu.vector_store %arg5[%c24_61, %c29], %74 {strides = array<i32>} : memref<32x32xbf16, #tpu.memory_space<vmem>>, vector<4x3xbf16>,
    } else {
    }
    %c0 = arith.constant 0 : index
    %c0_1 = arith.constant 0 : index
    %3 = vector.load %arg1[%c0, %c0_1] : memref<4x32xbf16, #tpu.memory_space<vmem>>, vector<4x32xbf16>
    %4 = vector.extract_strided_slice %3 {offsets = [0, 0], sizes = [4, 13], strides = [1, 1]} : vector<4x32xbf16> to vector<4x13xbf16>
    %c0_2 = arith.constant 0 : index
    %c3 = arith.constant 3 : index
    %5 = vector.load %arg5[%c0_2, %c3] : memref<32x32xbf16, #tpu.memory_space<vmem>>, vector<4x13xbf16>
    tpu.vector_store %arg5[%c0_2, %c3], %4 {strides = array<i32>} : memref<32x32xbf16, #tpu.memory_space<vmem>>, vector<4x13xbf16>,
    %6 = vector.extract_strided_slice %3 {offsets = [0, 16], sizes = [4, 13], strides = [1, 1]} : vector<4x32xbf16> to vector<4x13xbf16>
    %c0_3 = arith.constant 0 : index
    %c19 = arith.constant 19 : index
    %7 = vector.load %arg5[%c0_3, %c19] : memref<32x32xbf16, #tpu.memory_space<vmem>>, vector<4x13xbf16>
    tpu.vector_store %arg5[%c0_3, %c19], %6 {strides = array<i32>} : memref<32x32xbf16, #tpu.memory_space<vmem>>, vector<4x13xbf16>,
    %8 = vector.extract_strided_slice %3 {offsets = [0, 0], sizes = [4, 14], strides = [1, 1]} : vector<4x32xbf16> to vector<4x14xbf16>
    %c4 = arith.constant 4 : index
    %c2 = arith.constant 2 : index
    %9 = vector.load %arg5[%c4, %c2] : memref<32x32xbf16, #tpu.memory_space<vmem>>, vector<4x14xbf16>
    tpu.vector_store %arg5[%c4, %c2], %8 {strides = array<i32>} : memref<32x32xbf16, #tpu.memory_space<vmem>>, vector<4x14xbf16>,
    %10 = vector.extract_strided_slice %3 {offsets = [0, 16], sizes = [4, 14], strides = [1, 1]} : vector<4x32xbf16> to vector<4x14xbf16>
    %c4_4 = arith.constant 4 : index
    %c18 = arith.constant 18 : index
    %11 = vector.load %arg5[%c4_4, %c18] : memref<32x32xbf16, #tpu.memory_space<vmem>>, vector<4x14xbf16>
    tpu.vector_store %arg5[%c4_4, %c18], %10 {strides = array<i32>} : memref<32x32xbf16, #tpu.memory_space<vmem>>, vector<4x14xbf16>,
    %12 = vector.extract_strided_slice %3 {offsets = [0, 0], sizes = [4, 15], strides = [1, 1]} : vector<4x32xbf16> to vector<4x15xbf16>
    %c8 = arith.constant 8 : index
    %c1 = arith.constant 1 : index
    %13 = vector.load %arg5[%c8, %c1] : memref<32x32xbf16, #tpu.memory_space<vmem>>, vector<4x15xbf16>
    tpu.vector_store %arg5[%c8, %c1], %12 {strides = array<i32>} : memref<32x32xbf16, #tpu.memory_space<vmem>>, vector<4x15xbf16>,
    %14 = vector.extract_strided_slice %3 {offsets = [0, 16], sizes = [4, 15], strides = [1, 1]} : vector<4x32xbf16> to vector<4x15xbf16>
    %c8_5 = arith.constant 8 : index
    %c17 = arith.constant 17 : index
    %15 = vector.load %arg5[%c8_5, %c17] : memref<32x32xbf16, #tpu.memory_space<vmem>>, vector<4x15xbf16>
    tpu.vector_store %arg5[%c8_5, %c17], %14 {strides = array<i32>} : memref<32x32xbf16, #tpu.memory_space<vmem>>, vector<4x15xbf16>,
    %16 = vector.extract_strided_slice %3 {offsets = [0, 0], sizes = [4, 16], strides = [1, 1]} : vector<4x32xbf16> to vector<4x16xbf16>
    %c12 = arith.constant 12 : index
    %c0_6 = arith.constant 0 : index
    %17 = vector.load %arg5[%c12, %c0_6] : memref<32x32xbf16, #tpu.memory_space<vmem>>, vector<4x16xbf16>
    tpu.vector_store %arg5[%c12, %c0_6], %16 {strides = array<i32>} : memref<32x32xbf16, #tpu.memory_space<vmem>>, vector<4x16xbf16>,
    %18 = vector.extract_strided_slice %3 {offsets = [0, 16], sizes = [4, 16], strides = [1, 1]} : vector<4x32xbf16> to vector<4x16xbf16>
    %c12_7 = arith.constant 12 : index
    %c16 = arith.constant 16 : index
    %19 = vector.load %arg5[%c12_7, %c16] : memref<32x32xbf16, #tpu.memory_space<vmem>>, vector<4x16xbf16>
    tpu.vector_store %arg5[%c12_7, %c16], %18 {strides = array<i32>} : memref<32x32xbf16, #tpu.memory_space<vmem>>, vector<4x16xbf16>,
    %20 = vector.extract_strided_slice %3 {offsets = [0, 1], sizes = [4, 15], strides = [1, 1]} : vector<4x32xbf16> to vector<4x15xbf16>
    %c16_8 = arith.constant 16 : index
    %c0_9 = arith.constant 0 : index
    %21 = vector.load %arg5[%c16_8, %c0_9] : memref<32x32xbf16, #tpu.memory_space<vmem>>, vector<4x15xbf16>
    tpu.vector_store %arg5[%c16_8, %c0_9], %20 {strides = array<i32>} : memref<32x32xbf16, #tpu.memory_space<vmem>>, vector<4x15xbf16>,
    %22 = vector.extract_strided_slice %3 {offsets = [0, 17], sizes = [4, 15], strides = [1, 1]} : vector<4x32xbf16> to vector<4x15xbf16>
    %c16_10 = arith.constant 16 : index
    %c16_11 = arith.constant 16 : index
    %23 = vector.load %arg5[%c16_10, %c16_11] : memref<32x32xbf16, #tpu.memory_space<vmem>>, vector<4x15xbf16>
    tpu.vector_store %arg5[%c16_10, %c16_11], %22 {strides = array<i32>} : memref<32x32xbf16, #tpu.memory_space<vmem>>, vector<4x15xbf16>,
    %24 = vector.extract_strided_slice %3 {offsets = [0, 2], sizes = [4, 14], strides = [1, 1]} : vector<4x32xbf16> to vector<4x14xbf16>
    %c20 = arith.constant 20 : index
    %c0_12 = arith.constant 0 : index
    %25 = vector.load %arg5[%c20, %c0_12] : memref<32x32xbf16, #tpu.memory_space<vmem>>, vector<4x14xbf16>
    tpu.vector_store %arg5[%c20, %c0_12], %24 {strides = array<i32>} : memref<32x32xbf16, #tpu.memory_space<vmem>>, vector<4x14xbf16>,
    %26 = vector.extract_strided_slice %3 {offsets = [0, 18], sizes = [4, 14], strides = [1, 1]} : vector<4x32xbf16> to vector<4x14xbf16>
    %c20_13 = arith.constant 20 : index
    %c16_14 = arith.constant 16 : index
    %27 = vector.load %arg5[%c20_13, %c16_14] : memref<32x32xbf16, #tpu.memory_space<vmem>>, vector<4x14xbf16>
    tpu.vector_store %arg5[%c20_13, %c16_14], %26 {strides = array<i32>} : memref<32x32xbf16, #tpu.memory_space<vmem>>, vector<4x14xbf16>,
    %28 = vector.extract_strided_slice %3 {offsets = [0, 3], sizes = [4, 13], strides = [1, 1]} : vector<4x32xbf16> to vector<4x13xbf16>
    %c24 = arith.constant 24 : index
    %c0_15 = arith.constant 0 : index
    %29 = vector.load %arg5[%c24, %c0_15] : memref<32x32xbf16, #tpu.memory_space<vmem>>, vector<4x13xbf16>
    tpu.vector_store %arg5[%c24, %c0_15], %28 {strides = array<i32>} : memref<32x32xbf16, #tpu.memory_space<vmem>>, vector<4x13xbf16>,
    %30 = vector.extract_strided_slice %3 {offsets = [0, 19], sizes = [4, 13], strides = [1, 1]} : vector<4x32xbf16> to vector<4x13xbf16>
    %c24_16 = arith.constant 24 : index
    %c16_17 = arith.constant 16 : index
    %31 = vector.load %arg5[%c24_16, %c16_17] : memref<32x32xbf16, #tpu.memory_space<vmem>>, vector<4x13xbf16>
    tpu.vector_store %arg5[%c24_16, %c16_17], %30 {strides = array<i32>} : memref<32x32xbf16, #tpu.memory_space<vmem>>, vector<4x13xbf16>,
    %c0_18 = arith.constant 0 : index
    %c0_19 = arith.constant 0 : index
    %32 = vector.load %arg2[%c0_18, %c0_19] : memref<8x32xbf16, #tpu.memory_space<vmem>>, vector<8x32xbf16>
    %c0_20 = arith.constant 0 : index
    %c0_21 = arith.constant 0 : index
    %33 = vector.load %arg5[%c0_20, %c0_21] : memref<32x32xbf16, #tpu.memory_space<vmem>>, vector<32x32xbf16>
    %cst = arith.constant dense<0.000000e+00> : vector<8x32xf32>
    %34 = tpu.matmul %32, %33, %cst {dimension_numbers = #tpu.dot_dimension_numbers<[1], [0], [0], [1], [0, 0, 1, 1], [], []>} : vector<8x32xbf16>, vector<32x32xbf16>, vector<8x32xf32> -> vector<8x32xf32>
    %35 = arith.truncf %34 : vector<8x32xf32> to vector<8x32xbf16>
    %c0_22 = arith.constant 0 : index
    %c0_23 = arith.constant 0 : index
    %36 = vector.load %arg3[%c0_22, %c0_23] : memref<8x32xbf16, #tpu.memory_space<vmem>>, vector<8x32xbf16>
    tpu.vector_store %arg3[%c0_22, %c0_23], %35 {strides = array<i32>} : memref<8x32xbf16, #tpu.memory_space<vmem>>, vector<8x32xbf16>,
    %cst_24 = arith.constant dense<0.000000e+00> : vector<8xf32>
    %37 = vector.multi_reduction <add>, %34, %cst_24 [1] : vector<8x32xf32> to vector<8xf32>
    %38 = vector.shape_cast %37 : vector<8xf32> to vector<8x1xf32>
    %cst_25 = arith.constant 3.125000e-02 : f32
    %39 = vector.broadcast %cst_25 : f32 to vector<8x1xf32>
    %40 = arith.mulf %38, %39 : vector<8x1xf32>
    %41 = vector.broadcast %40 : vector<8x1xf32> to vector<8x32xf32>
    %42 = arith.subf %34, %41 : vector<8x32xf32>
    %43 = arith.mulf %42, %42 : vector<8x32xf32>
    %cst_26 = arith.constant dense<0.000000e+00> : vector<8xf32>
    %44 = vector.multi_reduction <add>, %43, %cst_26 [1] : vector<8x32xf32> to vector<8xf32>
    %45 = vector.shape_cast %44 : vector<8xf32> to vector<8x1xf32>
    %46 = tpu.concatenate %38, %45 in 1 : vector<8x1xf32>, vector<8x1xf32> -> vector<8x2xf32>
    %c0_27 = arith.constant 0 : index
    %c0_28 = arith.constant 0 : index
    %c0_29 = arith.constant 0 : index
    %47 = vector.load %arg4[%c0_27, %c0_28, %c0_29] : memref<1x8x2xf32, #tpu.memory_space<vmem>>, vector<1x8x2xf32>
    %48 = vector.shape_cast %47 : vector<1x8x2xf32> to vector<8x2xf32>
    %49 = vector.shape_cast %46 : vector<8x2xf32> to vector<1x8x2xf32>
    tpu.vector_store %arg4[%c0_27, %c0_28, %c0_29], %49 {strides = array<i32>} : memref<1x8x2xf32, #tpu.memory_space<vmem>>, vector<1x8x2xf32>,
    return
  }
  func.func @transform_0(%arg0: i32) -> (i32, i32) {
    %c0_i32 = arith.constant 0 : i32
    %c0_i32_0 = arith.constant 0 : i32
    return %c0_i32, %arg0 : i32, i32
  }
  func.func @transform_1(%arg0: i32) -> (i32, i32) {
    %c0_i32 = arith.constant 0 : i32
    %c0_i32_0 = arith.constant 0 : i32
    %c0_i32_1 = arith.constant 0 : i32
    return %c0_i32, %c0_i32_0 : i32, i32
  }
  func.func @transform_2(%arg0: i32) -> (i32, i32) {
    %c0_i32 = arith.constant 0 : i32
    %c0_i32_0 = arith.constant 0 : i32
    return %c0_i32, %arg0 : i32, i32
  }
  func.func @transform_3(%arg0: i32) -> (i32, i32, i32) {
    %c0_i32 = arith.constant 0 : i32
    %c0_i32_0 = arith.constant 0 : i32
    %c0_i32_1 = arith.constant 0 : i32
    return %arg0, %c0_i32, %c0_i32_0 : i32, i32, i32
  }
}

module attributes {stable_mosaic.version = 11 : i64} {
  func.func @_bn_relu_kernel(%arg0: i32, %arg1: memref<8x32xbf16, #tpu.memory_space<vmem>>, %arg2: memref<8x1xf32, #tpu.memory_space<vmem>>, %arg3: memref<8x1xf32, #tpu.memory_space<vmem>>, %arg4: memref<8x32xf32, #tpu.memory_space<vmem>>) attributes {dimension_semantics = [#tpu.dimension_semantics<arbitrary>], iteration_bounds = array<i64: 1>, scalar_prefetch = 0 : i64, scratch_operands = 0 : i64, tpu.core_type = #tpu.core_type<tc>, window_params = [{transform_indices = @transform_0, window_bounds = array<i64: 8, 32>}, {pipeline_mode = #tpu.pipeline_mode<synchronous>, transform_indices = @transform_1, window_bounds = array<i64: 8, 1>}, {pipeline_mode = #tpu.pipeline_mode<synchronous>, transform_indices = @transform_2, window_bounds = array<i64: 8, 1>}, {transform_indices = @transform_3, window_bounds = array<i64: 8, 32>}]} {
    %c0 = arith.constant 0 : index
    %c0_0 = arith.constant 0 : index
    %0 = vector.load %arg1[%c0, %c0_0] : memref<8x32xbf16, #tpu.memory_space<vmem>>, vector<8x32xbf16>
    %1 = arith.extf %0 : vector<8x32xbf16> to vector<8x32xf32>
    %c0_1 = arith.constant 0 : index
    %c0_2 = arith.constant 0 : index
    %2 = vector.load %arg2[%c0_1, %c0_2] : memref<8x1xf32, #tpu.memory_space<vmem>>, vector<8x1xf32>
    %3 = vector.broadcast %2 : vector<8x1xf32> to vector<8x32xf32>
    %4 = arith.mulf %1, %3 : vector<8x32xf32>
    %c0_3 = arith.constant 0 : index
    %c0_4 = arith.constant 0 : index
    %5 = vector.load %arg3[%c0_3, %c0_4] : memref<8x1xf32, #tpu.memory_space<vmem>>, vector<8x1xf32>
    %6 = vector.broadcast %5 : vector<8x1xf32> to vector<8x32xf32>
    %7 = arith.addf %4, %6 : vector<8x32xf32>
    %cst = arith.constant 0.000000e+00 : f32
    %8 = vector.broadcast %cst : f32 to vector<8x32xf32>
    %9 = arith.maximumf %7, %8 : vector<8x32xf32>
    %c0_5 = arith.constant 0 : index
    %c0_6 = arith.constant 0 : index
    %10 = vector.load %arg4[%c0_5, %c0_6] : memref<8x32xf32, #tpu.memory_space<vmem>>, vector<8x32xf32>
    tpu.vector_store %arg4[%c0_5, %c0_6], %9 {strides = array<i32>} : memref<8x32xf32, #tpu.memory_space<vmem>>, vector<8x32xf32>,
    return
  }
  func.func @transform_0(%arg0: i32) -> (i32, i32) {
    %c0_i32 = arith.constant 0 : i32
    %c0_i32_0 = arith.constant 0 : i32
    return %c0_i32, %arg0 : i32, i32
  }
  func.func @transform_1(%arg0: i32) -> (i32, i32) {
    %c0_i32 = arith.constant 0 : i32
    %c0_i32_0 = arith.constant 0 : i32
    %c0_i32_1 = arith.constant 0 : i32
    return %c0_i32, %c0_i32_0 : i32, i32
  }
  func.func @transform_2(%arg0: i32) -> (i32, i32) {
    %c0_i32 = arith.constant 0 : i32
    %c0_i32_0 = arith.constant 0 : i32
    %c0_i32_1 = arith.constant 0 : i32
    return %c0_i32, %c0_i32_0 : i32, i32
  }
  func.func @transform_3(%arg0: i32) -> (i32, i32) {
    %c0_i32 = arith.constant 0 : i32
    %c0_i32_0 = arith.constant 0 : i32
    return %c0_i32, %arg0 : i32, i32
  }
}

module attributes {stable_mosaic.version = 11 : i64} {
  func.func @kernel(%arg0: i32, %arg1: memref<8x32xbf16, #tpu.memory_space<vmem>>, %arg2: memref<8x1xf32, #tpu.memory_space<vmem>>, %arg3: memref<8x1xf32, #tpu.memory_space<vmem>>, %arg4: memref<8x64xbf16, #tpu.memory_space<vmem>>, %arg5: memref<8x32xbf16, #tpu.memory_space<vmem>>, %arg6: memref<1x8x2xf32, #tpu.memory_space<vmem>>, %arg7: memref<64x32xbf16, #tpu.memory_space<vmem>>) attributes {dimension_semantics = [#tpu.dimension_semantics<arbitrary>], iteration_bounds = array<i64: 1>, scalar_prefetch = 0 : i64, scratch_operands = 1 : i64, tpu.core_type = #tpu.core_type<tc>, window_params = [{transform_indices = @transform_0, window_bounds = array<i64: 8, 32>}, {pipeline_mode = #tpu.pipeline_mode<synchronous>, transform_indices = @transform_1, window_bounds = array<i64: 8, 1>}, {pipeline_mode = #tpu.pipeline_mode<synchronous>, transform_indices = @transform_2, window_bounds = array<i64: 8, 1>}, {pipeline_mode = #tpu.pipeline_mode<synchronous>, transform_indices = @transform_3, window_bounds = array<i64: 8, 64>}, {transform_indices = @transform_4, window_bounds = array<i64: 8, 32>}, {transform_indices = @transform_5, window_bounds = array<i64: 1, 8, 2>}]} {
    %c0_i32 = arith.constant 0 : i32
    %0 = arith.cmpi eq, %arg0, %c0_i32 : i32
    %1 = arith.extui %0 : i1 to i32
    %c0_i32_0 = arith.constant 0 : i32
    %2 = arith.cmpi ne, %1, %c0_i32_0 : i32
    scf.if %2 {
      %cst_35 = arith.constant 0.000000e+00 : bf16
      %60 = vector.broadcast %cst_35 : bf16 to vector<8x32xbf16>
      %c56 = arith.constant 56 : index
      %c0_36 = arith.constant 0 : index
      %61 = vector.load %arg7[%c56, %c0_36] : memref<64x32xbf16, #tpu.memory_space<vmem>>, vector<8x32xbf16>
      tpu.vector_store %arg7[%c56, %c0_36], %60 {strides = array<i32>} : memref<64x32xbf16, #tpu.memory_space<vmem>>, vector<8x32xbf16>,
      %cst_37 = arith.constant 0.000000e+00 : bf16
      %62 = vector.broadcast %cst_37 : bf16 to vector<8x3xbf16>
      %c0_38 = arith.constant 0 : index
      %c0_39 = arith.constant 0 : index
      %63 = vector.load %arg7[%c0_38, %c0_39] : memref<64x32xbf16, #tpu.memory_space<vmem>>, vector<8x3xbf16>
      tpu.vector_store %arg7[%c0_38, %c0_39], %62 {strides = array<i32>} : memref<64x32xbf16, #tpu.memory_space<vmem>>, vector<8x3xbf16>,
      %cst_40 = arith.constant 0.000000e+00 : bf16
      %64 = vector.broadcast %cst_40 : bf16 to vector<8x3xbf16>
      %c0_41 = arith.constant 0 : index
      %c16_42 = arith.constant 16 : index
      %65 = vector.load %arg7[%c0_41, %c16_42] : memref<64x32xbf16, #tpu.memory_space<vmem>>, vector<8x3xbf16>
      tpu.vector_store %arg7[%c0_41, %c16_42], %64 {strides = array<i32>} : memref<64x32xbf16, #tpu.memory_space<vmem>>, vector<8x3xbf16>,
      %cst_43 = arith.constant 0.000000e+00 : bf16
      %66 = vector.broadcast %cst_43 : bf16 to vector<8x2xbf16>
      %c8_44 = arith.constant 8 : index
      %c0_45 = arith.constant 0 : index
      %67 = vector.load %arg7[%c8_44, %c0_45] : memref<64x32xbf16, #tpu.memory_space<vmem>>, vector<8x2xbf16>
      tpu.vector_store %arg7[%c8_44, %c0_45], %66 {strides = array<i32>} : memref<64x32xbf16, #tpu.memory_space<vmem>>, vector<8x2xbf16>,
      %cst_46 = arith.constant 0.000000e+00 : bf16
      %68 = vector.broadcast %cst_46 : bf16 to vector<8x2xbf16>
      %c8_47 = arith.constant 8 : index
      %c16_48 = arith.constant 16 : index
      %69 = vector.load %arg7[%c8_47, %c16_48] : memref<64x32xbf16, #tpu.memory_space<vmem>>, vector<8x2xbf16>
      tpu.vector_store %arg7[%c8_47, %c16_48], %68 {strides = array<i32>} : memref<64x32xbf16, #tpu.memory_space<vmem>>, vector<8x2xbf16>,
      %cst_49 = arith.constant 0.000000e+00 : bf16
      %70 = vector.broadcast %cst_49 : bf16 to vector<8x1xbf16>
      %c16_50 = arith.constant 16 : index
      %c0_51 = arith.constant 0 : index
      %71 = vector.load %arg7[%c16_50, %c0_51] : memref<64x32xbf16, #tpu.memory_space<vmem>>, vector<8x1xbf16>
      tpu.vector_store %arg7[%c16_50, %c0_51], %70 {strides = array<i32>} : memref<64x32xbf16, #tpu.memory_space<vmem>>, vector<8x1xbf16>,
      %cst_52 = arith.constant 0.000000e+00 : bf16
      %72 = vector.broadcast %cst_52 : bf16 to vector<8x1xbf16>
      %c16_53 = arith.constant 16 : index
      %c16_54 = arith.constant 16 : index
      %73 = vector.load %arg7[%c16_53, %c16_54] : memref<64x32xbf16, #tpu.memory_space<vmem>>, vector<8x1xbf16>
      tpu.vector_store %arg7[%c16_53, %c16_54], %72 {strides = array<i32>} : memref<64x32xbf16, #tpu.memory_space<vmem>>, vector<8x1xbf16>,
      %cst_55 = arith.constant 0.000000e+00 : bf16
      %74 = vector.broadcast %cst_55 : bf16 to vector<8x1xbf16>
      %c32_56 = arith.constant 32 : index
      %c15 = arith.constant 15 : index
      %75 = vector.load %arg7[%c32_56, %c15] : memref<64x32xbf16, #tpu.memory_space<vmem>>, vector<8x1xbf16>
      tpu.vector_store %arg7[%c32_56, %c15], %74 {strides = array<i32>} : memref<64x32xbf16, #tpu.memory_space<vmem>>, vector<8x1xbf16>,
      %cst_57 = arith.constant 0.000000e+00 : bf16
      %76 = vector.broadcast %cst_57 : bf16 to vector<8x1xbf16>
      %c32_58 = arith.constant 32 : index
      %c31 = arith.constant 31 : index
      %77 = vector.load %arg7[%c32_58, %c31] : memref<64x32xbf16, #tpu.memory_space<vmem>>, vector<8x1xbf16>
      tpu.vector_store %arg7[%c32_58, %c31], %76 {strides = array<i32>} : memref<64x32xbf16, #tpu.memory_space<vmem>>, vector<8x1xbf16>,
      %cst_59 = arith.constant 0.000000e+00 : bf16
      %78 = vector.broadcast %cst_59 : bf16 to vector<8x2xbf16>
      %c40_60 = arith.constant 40 : index
      %c14 = arith.constant 14 : index
      %79 = vector.load %arg7[%c40_60, %c14] : memref<64x32xbf16, #tpu.memory_space<vmem>>, vector<8x2xbf16>
      tpu.vector_store %arg7[%c40_60, %c14], %78 {strides = array<i32>} : memref<64x32xbf16, #tpu.memory_space<vmem>>, vector<8x2xbf16>,
      %cst_61 = arith.constant 0.000000e+00 : bf16
      %80 = vector.broadcast %cst_61 : bf16 to vector<8x2xbf16>
      %c40_62 = arith.constant 40 : index
      %c30 = arith.constant 30 : index
      %81 = vector.load %arg7[%c40_62, %c30] : memref<64x32xbf16, #tpu.memory_space<vmem>>, vector<8x2xbf16>
      tpu.vector_store %arg7[%c40_62, %c30], %80 {strides = array<i32>} : memref<64x32xbf16, #tpu.memory_space<vmem>>, vector<8x2xbf16>,
      %cst_63 = arith.constant 0.000000e+00 : bf16
      %82 = vector.broadcast %cst_63 : bf16 to vector<8x3xbf16>
      %c48_64 = arith.constant 48 : index
      %c13 = arith.constant 13 : index
      %83 = vector.load %arg7[%c48_64, %c13] : memref<64x32xbf16, #tpu.memory_space<vmem>>, vector<8x3xbf16>
      tpu.vector_store %arg7[%c48_64, %c13], %82 {strides = array<i32>} : memref<64x32xbf16, #tpu.memory_space<vmem>>, vector<8x3xbf16>,
      %cst_65 = arith.constant 0.000000e+00 : bf16
      %84 = vector.broadcast %cst_65 : bf16 to vector<8x3xbf16>
      %c48_66 = arith.constant 48 : index
      %c29 = arith.constant 29 : index
      %85 = vector.load %arg7[%c48_66, %c29] : memref<64x32xbf16, #tpu.memory_space<vmem>>, vector<8x3xbf16>
      tpu.vector_store %arg7[%c48_66, %c29], %84 {strides = array<i32>} : memref<64x32xbf16, #tpu.memory_space<vmem>>, vector<8x3xbf16>,
    } else {
    }
    %c0 = arith.constant 0 : index
    %c0_1 = arith.constant 0 : index
    %3 = vector.load %arg1[%c0, %c0_1] : memref<8x32xbf16, #tpu.memory_space<vmem>>, vector<8x32xbf16>
    %4 = arith.extf %3 : vector<8x32xbf16> to vector<8x32xf32>
    %c0_2 = arith.constant 0 : index
    %c0_3 = arith.constant 0 : index
    %5 = vector.load %arg2[%c0_2, %c0_3] : memref<8x1xf32, #tpu.memory_space<vmem>>, vector<8x1xf32>
    %6 = vector.broadcast %5 : vector<8x1xf32> to vector<8x32xf32>
    %7 = arith.mulf %4, %6 : vector<8x32xf32>
    %c0_4 = arith.constant 0 : index
    %c0_5 = arith.constant 0 : index
    %8 = vector.load %arg3[%c0_4, %c0_5] : memref<8x1xf32, #tpu.memory_space<vmem>>, vector<8x1xf32>
    %9 = vector.broadcast %8 : vector<8x1xf32> to vector<8x32xf32>
    %10 = arith.addf %7, %9 : vector<8x32xf32>
    %cst = arith.constant 0.000000e+00 : f32
    %11 = vector.broadcast %cst : f32 to vector<8x32xf32>
    %12 = arith.maximumf %10, %11 : vector<8x32xf32>
    %13 = arith.truncf %12 : vector<8x32xf32> to vector<8x32xbf16>
    %14 = vector.extract_strided_slice %13 {offsets = [0, 0], sizes = [8, 13], strides = [1, 1]} : vector<8x32xbf16> to vector<8x13xbf16>
    %c0_6 = arith.constant 0 : index
    %c3 = arith.constant 3 : index
    %15 = vector.load %arg7[%c0_6, %c3] : memref<64x32xbf16, #tpu.memory_space<vmem>>, vector<8x13xbf16>
    tpu.vector_store %arg7[%c0_6, %c3], %14 {strides = array<i32>} : memref<64x32xbf16, #tpu.memory_space<vmem>>, vector<8x13xbf16>,
    %16 = vector.extract_strided_slice %13 {offsets = [0, 16], sizes = [8, 13], strides = [1, 1]} : vector<8x32xbf16> to vector<8x13xbf16>
    %c0_7 = arith.constant 0 : index
    %c19 = arith.constant 19 : index
    %17 = vector.load %arg7[%c0_7, %c19] : memref<64x32xbf16, #tpu.memory_space<vmem>>, vector<8x13xbf16>
    tpu.vector_store %arg7[%c0_7, %c19], %16 {strides = array<i32>} : memref<64x32xbf16, #tpu.memory_space<vmem>>, vector<8x13xbf16>,
    %18 = vector.extract_strided_slice %13 {offsets = [0, 0], sizes = [8, 14], strides = [1, 1]} : vector<8x32xbf16> to vector<8x14xbf16>
    %c8 = arith.constant 8 : index
    %c2 = arith.constant 2 : index
    %19 = vector.load %arg7[%c8, %c2] : memref<64x32xbf16, #tpu.memory_space<vmem>>, vector<8x14xbf16>
    tpu.vector_store %arg7[%c8, %c2], %18 {strides = array<i32>} : memref<64x32xbf16, #tpu.memory_space<vmem>>, vector<8x14xbf16>,
    %20 = vector.extract_strided_slice %13 {offsets = [0, 16], sizes = [8, 14], strides = [1, 1]} : vector<8x32xbf16> to vector<8x14xbf16>
    %c8_8 = arith.constant 8 : index
    %c18 = arith.constant 18 : index
    %21 = vector.load %arg7[%c8_8, %c18] : memref<64x32xbf16, #tpu.memory_space<vmem>>, vector<8x14xbf16>
    tpu.vector_store %arg7[%c8_8, %c18], %20 {strides = array<i32>} : memref<64x32xbf16, #tpu.memory_space<vmem>>, vector<8x14xbf16>,
    %22 = vector.extract_strided_slice %13 {offsets = [0, 0], sizes = [8, 15], strides = [1, 1]} : vector<8x32xbf16> to vector<8x15xbf16>
    %c16 = arith.constant 16 : index
    %c1 = arith.constant 1 : index
    %23 = vector.load %arg7[%c16, %c1] : memref<64x32xbf16, #tpu.memory_space<vmem>>, vector<8x15xbf16>
    tpu.vector_store %arg7[%c16, %c1], %22 {strides = array<i32>} : memref<64x32xbf16, #tpu.memory_space<vmem>>, vector<8x15xbf16>,
    %24 = vector.extract_strided_slice %13 {offsets = [0, 16], sizes = [8, 15], strides = [1, 1]} : vector<8x32xbf16> to vector<8x15xbf16>
    %c16_9 = arith.constant 16 : index
    %c17 = arith.constant 17 : index
    %25 = vector.load %arg7[%c16_9, %c17] : memref<64x32xbf16, #tpu.memory_space<vmem>>, vector<8x15xbf16>
    tpu.vector_store %arg7[%c16_9, %c17], %24 {strides = array<i32>} : memref<64x32xbf16, #tpu.memory_space<vmem>>, vector<8x15xbf16>,
    %26 = vector.extract_strided_slice %13 {offsets = [0, 0], sizes = [8, 16], strides = [1, 1]} : vector<8x32xbf16> to vector<8x16xbf16>
    %c24 = arith.constant 24 : index
    %c0_10 = arith.constant 0 : index
    %27 = vector.load %arg7[%c24, %c0_10] : memref<64x32xbf16, #tpu.memory_space<vmem>>, vector<8x16xbf16>
    tpu.vector_store %arg7[%c24, %c0_10], %26 {strides = array<i32>} : memref<64x32xbf16, #tpu.memory_space<vmem>>, vector<8x16xbf16>,
    %28 = vector.extract_strided_slice %13 {offsets = [0, 16], sizes = [8, 16], strides = [1, 1]} : vector<8x32xbf16> to vector<8x16xbf16>
    %c24_11 = arith.constant 24 : index
    %c16_12 = arith.constant 16 : index
    %29 = vector.load %arg7[%c24_11, %c16_12] : memref<64x32xbf16, #tpu.memory_space<vmem>>, vector<8x16xbf16>
    tpu.vector_store %arg7[%c24_11, %c16_12], %28 {strides = array<i32>} : memref<64x32xbf16, #tpu.memory_space<vmem>>, vector<8x16xbf16>,
    %30 = vector.extract_strided_slice %13 {offsets = [0, 1], sizes = [8, 15], strides = [1, 1]} : vector<8x32xbf16> to vector<8x15xbf16>
    %c32 = arith.constant 32 : index
    %c0_13 = arith.constant 0 : index
    %31 = vector.load %arg7[%c32, %c0_13] : memref<64x32xbf16, #tpu.memory_space<vmem>>, vector<8x15xbf16>
    tpu.vector_store %arg7[%c32, %c0_13], %30 {strides = array<i32>} : memref<64x32xbf16, #tpu.memory_space<vmem>>, vector<8x15xbf16>,
    %32 = vector.extract_strided_slice %13 {offsets = [0, 17], sizes = [8, 15], strides = [1, 1]} : vector<8x32xbf16> to vector<8x15xbf16>
    %c32_14 = arith.constant 32 : index
    %c16_15 = arith.constant 16 : index
    %33 = vector.load %arg7[%c32_14, %c16_15] : memref<64x32xbf16, #tpu.memory_space<vmem>>, vector<8x15xbf16>
    tpu.vector_store %arg7[%c32_14, %c16_15], %32 {strides = array<i32>} : memref<64x32xbf16, #tpu.memory_space<vmem>>, vector<8x15xbf16>,
    %34 = vector.extract_strided_slice %13 {offsets = [0, 2], sizes = [8, 14], strides = [1, 1]} : vector<8x32xbf16> to vector<8x14xbf16>
    %c40 = arith.constant 40 : index
    %c0_16 = arith.constant 0 : index
    %35 = vector.load %arg7[%c40, %c0_16] : memref<64x32xbf16, #tpu.memory_space<vmem>>, vector<8x14xbf16>
    tpu.vector_store %arg7[%c40, %c0_16], %34 {strides = array<i32>} : memref<64x32xbf16, #tpu.memory_space<vmem>>, vector<8x14xbf16>,
    %36 = vector.extract_strided_slice %13 {offsets = [0, 18], sizes = [8, 14], strides = [1, 1]} : vector<8x32xbf16> to vector<8x14xbf16>
    %c40_17 = arith.constant 40 : index
    %c16_18 = arith.constant 16 : index
    %37 = vector.load %arg7[%c40_17, %c16_18] : memref<64x32xbf16, #tpu.memory_space<vmem>>, vector<8x14xbf16>
    tpu.vector_store %arg7[%c40_17, %c16_18], %36 {strides = array<i32>} : memref<64x32xbf16, #tpu.memory_space<vmem>>, vector<8x14xbf16>,
    %38 = vector.extract_strided_slice %13 {offsets = [0, 3], sizes = [8, 13], strides = [1, 1]} : vector<8x32xbf16> to vector<8x13xbf16>
    %c48 = arith.constant 48 : index
    %c0_19 = arith.constant 0 : index
    %39 = vector.load %arg7[%c48, %c0_19] : memref<64x32xbf16, #tpu.memory_space<vmem>>, vector<8x13xbf16>
    tpu.vector_store %arg7[%c48, %c0_19], %38 {strides = array<i32>} : memref<64x32xbf16, #tpu.memory_space<vmem>>, vector<8x13xbf16>,
    %40 = vector.extract_strided_slice %13 {offsets = [0, 19], sizes = [8, 13], strides = [1, 1]} : vector<8x32xbf16> to vector<8x13xbf16>
    %c48_20 = arith.constant 48 : index
    %c16_21 = arith.constant 16 : index
    %41 = vector.load %arg7[%c48_20, %c16_21] : memref<64x32xbf16, #tpu.memory_space<vmem>>, vector<8x13xbf16>
    tpu.vector_store %arg7[%c48_20, %c16_21], %40 {strides = array<i32>} : memref<64x32xbf16, #tpu.memory_space<vmem>>, vector<8x13xbf16>,
    %c0_22 = arith.constant 0 : index
    %c0_23 = arith.constant 0 : index
    %42 = vector.load %arg4[%c0_22, %c0_23] : memref<8x64xbf16, #tpu.memory_space<vmem>>, vector<8x64xbf16>
    %c0_24 = arith.constant 0 : index
    %c0_25 = arith.constant 0 : index
    %43 = vector.load %arg7[%c0_24, %c0_25] : memref<64x32xbf16, #tpu.memory_space<vmem>>, vector<64x32xbf16>
    %cst_26 = arith.constant dense<0.000000e+00> : vector<8x32xf32>
    %44 = tpu.matmul %42, %43, %cst_26 {dimension_numbers = #tpu.dot_dimension_numbers<[1], [0], [0], [1], [0, 0, 1, 1], [], []>} : vector<8x64xbf16>, vector<64x32xbf16>, vector<8x32xf32> -> vector<8x32xf32>
    %45 = arith.truncf %44 : vector<8x32xf32> to vector<8x32xbf16>
    %c0_27 = arith.constant 0 : index
    %c0_28 = arith.constant 0 : index
    %46 = vector.load %arg5[%c0_27, %c0_28] : memref<8x32xbf16, #tpu.memory_space<vmem>>, vector<8x32xbf16>
    tpu.vector_store %arg5[%c0_27, %c0_28], %45 {strides = array<i32>} : memref<8x32xbf16, #tpu.memory_space<vmem>>, vector<8x32xbf16>,
    %cst_29 = arith.constant dense<0.000000e+00> : vector<8xf32>
    %47 = vector.multi_reduction <add>, %44, %cst_29 [1] : vector<8x32xf32> to vector<8xf32>
    %48 = vector.shape_cast %47 : vector<8xf32> to vector<8x1xf32>
    %cst_30 = arith.constant 3.125000e-02 : f32
    %49 = vector.broadcast %cst_30 : f32 to vector<8x1xf32>
    %50 = arith.mulf %48, %49 : vector<8x1xf32>
    %51 = vector.broadcast %50 : vector<8x1xf32> to vector<8x32xf32>
    %52 = arith.subf %44, %51 : vector<8x32xf32>
    %53 = arith.mulf %52, %52 : vector<8x32xf32>
    %cst_31 = arith.constant dense<0.000000e+00> : vector<8xf32>
    %54 = vector.multi_reduction <add>, %53, %cst_31 [1] : vector<8x32xf32> to vector<8xf32>
    %55 = vector.shape_cast %54 : vector<8xf32> to vector<8x1xf32>
    %56 = tpu.concatenate %48, %55 in 1 : vector<8x1xf32>, vector<8x1xf32> -> vector<8x2xf32>
    %c0_32 = arith.constant 0 : index
    %c0_33 = arith.constant 0 : index
    %c0_34 = arith.constant 0 : index
    %57 = vector.load %arg6[%c0_32, %c0_33, %c0_34] : memref<1x8x2xf32, #tpu.memory_space<vmem>>, vector<1x8x2xf32>
    %58 = vector.shape_cast %57 : vector<1x8x2xf32> to vector<8x2xf32>
    %59 = vector.shape_cast %56 : vector<8x2xf32> to vector<1x8x2xf32>
    tpu.vector_store %arg6[%c0_32, %c0_33, %c0_34], %59 {strides = array<i32>} : memref<1x8x2xf32, #tpu.memory_space<vmem>>, vector<1x8x2xf32>,
    return
  }
  func.func @transform_0(%arg0: i32) -> (i32, i32) {
    %c0_i32 = arith.constant 0 : i32
    %c0_i32_0 = arith.constant 0 : i32
    return %c0_i32, %arg0 : i32, i32
  }
  func.func @transform_1(%arg0: i32) -> (i32, i32) {
    %c0_i32 = arith.constant 0 : i32
    %c0_i32_0 = arith.constant 0 : i32
    %c0_i32_1 = arith.constant 0 : i32
    return %c0_i32, %c0_i32_0 : i32, i32
  }
  func.func @transform_2(%arg0: i32) -> (i32, i32) {
    %c0_i32 = arith.constant 0 : i32
    %c0_i32_0 = arith.constant 0 : i32
    %c0_i32_1 = arith.constant 0 : i32
    return %c0_i32, %c0_i32_0 : i32, i32
  }
  func.func @transform_3(%arg0: i32) -> (i32, i32) {
    %c0_i32 = arith.constant 0 : i32
    %c0_i32_0 = arith.constant 0 : i32
    %c0_i32_1 = arith.constant 0 : i32
    return %c0_i32, %c0_i32_0 : i32, i32
  }
  func.func @transform_4(%arg0: i32) -> (i32, i32) {
    %c0_i32 = arith.constant 0 : i32
    %c0_i32_0 = arith.constant 0 : i32
    return %c0_i32, %arg0 : i32, i32
  }
  func.func @transform_5(%arg0: i32) -> (i32, i32, i32) {
    %c0_i32 = arith.constant 0 : i32
    %c0_i32_0 = arith.constant 0 : i32
    %c0_i32_1 = arith.constant 0 : i32
    return %arg0, %c0_i32, %c0_i32_0 : i32, i32, i32
  }
}

</mosaic_0001>

<bundles_post_ra>
// kernel: double_conv_pallas.5
= control target key start
LH: loop header
LB: loop body
LE: loop exit
PB: predicated region body
PF: predicated region fallthrough
CT: control target
= control target key end

     0   :  { %v39_v0 = vmov 0   ;;  %vm31_vm0 = vcmask 261120   ;;  %s72_s1 = inlined_call_operand.vmem [shape: f32[8,1], index: 1, kind: input, shape index: {}]   ;;  %s73_s2 = inlined_call_operand.vmem [shape: f32[8,1], index: 2, kind: input, shape index: {}]   ;;  %s74_s0 = inlined_call_operand.vmem [shape: bf16[8,32], index: 0, kind: input, shape index: {}]   ;;  %s75_s3 = inlined_call_operand.vmem [shape: f32[8,32], index: 3, kind: output, shape index: {}]  }
   0x1   :  { %38 = vset.pattern.permute.xlu0 %v39_v0  ;;  %v16_v1 = vld [vmem:[%s72_s1] sm:$0xff] }
   0x2   :  { %19 = vperm.xlu0 %38, %v16_v1   ;;  %v23_v2 = vld [vmem:[%s73_s2] sm:$0xff] }
   0x3   :  { %v14_v4 = vld [vmem:[%s74_s0] sm:$0xf] }
   0x4   :  { %v15_v5 = vunpack.c.l.bf16 %v14_v4 }
   0xa   :  { %26 = vperm.xlu0 %38, %v23_v2  }
  0x74   :  { %v20_v3 = vpop.permute.xlu0 %19 }
  0x75   :  { %v22_v6 = vmul.f32 %v20_v3, %v15_v5 }
  0x7c   :  { %v27_v7 = vpop.permute.xlu0 %26 }
  0x7d   :  { %v29_v8 = vadd.f32 %v27_v7, %v22_v6 }
  0x7f   :  { %v30_v9 = vmax.f32 %v29_v8, 0.0 }
  0x81   :  { %32 = vst.msk [vmem:[%s75_s3] sm:$0xff] %vm31_vm0, %v30_v9 }

// kernel: double_conv_pallas.3
= control target key start
LH: loop header
LB: loop body
LE: loop exit
PB: predicated region body
PF: predicated region fallthrough
CT: control target
= control target key end

     0   :  { %s234_s14 = smov 3   ;;  %s235_s15 = smov 2   ;;  %vm20_vm0 = vcmask 17408   ;;  %vm22_vm1 = vcmask 148608   ;;  %v239_v12 = vmov 0   ;;  %vm32_vm2 = vcmask 124024   ;;  %s285_s0 = inlined_call_operand.vmem [shape: bf16[4,32], index: 0, kind: input, shape index: {}]   ;;  %s286_s1 = inlined_call_operand.vmem [shape: bf16[8,32], index: 1, kind: input, shape index: {}]   ;;  %s287_s2 = inlined_call_operand.vmem [shape: bf16[8,32], index: 2, kind: output, shape index: {0}]   ;;  %s288_s3 = inlined_call_operand.vmem [shape: f32[1,8,2], index: 3, kind: output, shape index: {1}]  }
   0x1   :  { %v44_v0 = vld [vmem:[%s285_s0] sm:$0x3]  ;;  %s236_s16 = smov 1   ;;  %s237_s0 = smov 127   ;;  %21 = vst.msk [vmem:[#allocation2] sm:$0x3] %vm20_vm0, %v239_v12 }
   0x2   :  { %46 = vst [vmem:[#allocation1] ss:$2 sm:$0xff] %v44_v0  ;;  %s238_s17 = smov 126   ;;  %vm34_vm3 = vcmask 255224   ;;  %s240_s18 = smov 125   ;;  %vm52_vm4 = vcmask 123928  }
   0x3   :  { %23 = vst.msk [vmem:[#allocation2] sm:$0x3] %vm22_vm1, %v239_v12  ;;  %vm24_vm5 = vcmask 11266   ;;  %vm26_vm6 = vcmask 142466   ;;  %vm69_vm7 = vcmask 125970   ;;  %vm28_vm8 = vcmask 1024  }
   0x4   :  { %33 = vst.msk [vmem:[#allocation2 + $0x8] sm:$0x3] %vm32_vm2, %v239_v12  ;;  %vm30_vm9 = vcmask 132224   ;;  %vm86_vm10 = vcmask 123912   ;;  %vm36_vm11 = vcmask 126066   ;;  %vm38_vm12 = vcmask 257266  }
   0x5   :  { %35 = vst.msk [vmem:[#allocation2 + $0x8] sm:$0x3] %vm34_vm3, %v239_v12  ;;  %vm40_vm13 = vcmask 124008   ;;  %vm42_vm14 = vcmask 255208   ;;  %vm114_vm15 = vcmask 115712   ;;  %vm18_vm0 = vcmask 257026  }
   0x6   :  { %25 = vst.msk [vmem:[#allocation2] sm:$0xc] %vm24_vm5, %v239_v12  ;;  %vm122_vm1 = vcmask 246912   ;;  %vm100_vm2 = vcmask 125954   ;;  %vm106_vm3 = vcmask 257154   ;;  %vm140_vm5 = vcmask 240770  }
   0x7   :  { %27 = vst.msk [vmem:[#allocation2] sm:$0xc] %vm26_vm6, %v239_v12  ;;  %vm60_vm6 = vcmask 255128   ;;  %v158_v30 = vld [vmem:[%s286_s1] sm:$0xf] }
   0x8   :  { %29 = vst.msk [vmem:[#allocation2 + $0x4] sm:$0x3] %vm28_vm8, %v239_v12  ;;  %vm148_vm8 = vcmask 99328  }
   0x9   :  { %v47_v1 = vld.sshfl [vmem:[#allocation1] sm:$0xff pattern:$0x75643120]  ;;  %31 = vst.msk [vmem:[#allocation2 + $0x4] sm:$0x3] %vm30_vm9, %v239_v12  ;;  %vm156_vm9 = vcmask 230528  }
   0xa   :  { %49 = vrot.lane.b32.xlu0 %v47_v1, %s234_s14  ;;  %54 = vst [vmem:[#allocation1] ss:$2 sm:$0xff] %v44_v0 }
   0xb   :  { %37 = vst.msk [vmem:[#allocation2 + $0x8] sm:$0xc] %vm36_vm11, %v239_v12  ;;  %vm175_vm11 = vcmask 261120  }
   0xc   :  { %39 = vst.msk [vmem:[#allocation2 + $0x8] sm:$0xc] %vm38_vm12, %v239_v12  ;;  %vm193_vm12 = vcmask 257024  }
   0xd   :  { %41 = vst.msk [vmem:[#allocation2 + $0xc] sm:$0x3] %vm40_vm13, %v239_v12  ;;  %vm204_vm13 = vcmask 7168  }
   0xe   :  { %43 = vst.msk [vmem:[#allocation2 + $0xc] sm:$0x3] %vm42_vm14, %v239_v12  ;;  %vm206_vm14 = vcmask 15360  }
   0xf   :  { %19 = vst.msk [vmem:[#allocation2 + $0xc] sm:$0xc] %vm18_vm0, %v239_v12 }
  0x11   :  { %v55_v2 = vld.sshfl [vmem:[#allocation1] sm:$0xff pattern:$0x75643120] }
  0x12   :  { %63 = vst [vmem:[#allocation1 + $0x1] ss:$2 sm:$0xff] %v44_v0 }
  0x19   :  { %v64_v3 = vld.sshfl [vmem:[#allocation1] sm:$0xff pattern:$0x75643120] }
  0x1a   :  { %72 = vst [vmem:[#allocation1 + $0x1] ss:$2 sm:$0xff] %v44_v0  ;;  %66 = vrot.lane.b32.xlu1 %v64_v3, %s235_s15 }
  0x21   :  { %v73_v4 = vld.sshfl [vmem:[#allocation1] sm:$0xff pattern:$0x75643120] }
  0x22   :  { %80 = vst [vmem:[#allocation1] ss:$2 sm:$0xff] %v44_v0 }
  0x29   :  { %v81_v5 = vld.sshfl [vmem:[#allocation1] sm:$0xff pattern:$0x75643120] }
  0x2a   :  { %88 = vst [vmem:[#allocation1] ss:$2 sm:$0xff] %v44_v0  ;;  %83 = vrot.lane.b32.xlu2 %v81_v5, %s236_s16 }
  0x31   :  { %v89_v6 = vld.sshfl [vmem:[#allocation1] sm:$0xff pattern:$0x75643120] }
  0x32   :  { %97 = vst [vmem:[#allocation1 + $0x1] ss:$2 sm:$0xff] %v44_v0 }
  0x39   :  { %v267_v7 = vld.sshfl [vmem:[#allocation1] sm:$0xff pattern:$0x75643120] }
  0x3a   :  { %103 = vst [vmem:[#allocation1 + $0x1] ss:$2 sm:$0xff] %v44_v0 }
  0x3b   :  { %101 = vst.msk [vmem:[#allocation2 + $0x4] sm:$0xc] %vm100_vm2, %v267_v7 }
  0x41   :  { %v269_v8 = vld.sshfl [vmem:[#allocation1] sm:$0xff pattern:$0x75643120] }
  0x42   :  { %108 = vst [vmem:[#allocation1] ss:$2 sm:$0xff] %v44_v0 }
  0x43   :  { %107 = vst.msk [vmem:[#allocation2 + $0x4] sm:$0xc] %vm106_vm3, %v269_v8 }
  0x49   :  { %v109_v9 = vld.sshfl [vmem:[#allocation1] sm:$0xff pattern:$0x75643120] }
  0x4a   :  { %111 = vrot.lane.b32.xlu0 %v109_v9, %s237_s0  ;;  %116 = vst [vmem:[#allocation1] ss:$2 sm:$0xff] %v44_v0 }
  0x51   :  { %v117_v10 = vld.sshfl [vmem:[#allocation1] sm:$0xff pattern:$0x75643120] }
  0x52   :  { %125 = vst [vmem:[#allocation1 + $0x1] ss:$2 sm:$0xff] %v44_v0  ;;  %119 = vrot.lane.b32.xlu1 %v117_v10, %s237_s0 }
  0x59   :  { %v126_v11 = vld.sshfl [vmem:[#allocation1] sm:$0xff pattern:$0x75643120] }
  0x5a   :  { %128 = vrot.lane.b32.xlu0 %v126_v11, %s238_s17  ;;  %134 = vst [vmem:[#allocation1 + $0x1] ss:$2 sm:$0xff] %v44_v0 }
  0x61   :  { %v135_v13 = vld.sshfl [vmem:[#allocation1] sm:$0xff pattern:$0x75643120] }
  0x62   :  { %142 = vst [vmem:[#allocation1] ss:$2 sm:$0xff] %v44_v0  ;;  %57 = vrot.lane.b32.xlu0 %v55_v2, %s234_s14  ;;  %137 = vrot.lane.b32.xlu2 %v135_v13, %s238_s17 }
  0x69   :  { %v143_v14 = vld.sshfl [vmem:[#allocation1] sm:$0xff pattern:$0x75643120] }
  0x6a   :  { %145 = vrot.lane.b32.xlu1 %v143_v14, %s240_s18  ;;  %150 = vst [vmem:[#allocation1] ss:$2 sm:$0xff] %v44_v0 }
  0x71   :  { %v151_v15 = vld.sshfl [vmem:[#allocation1] sm:$0xff pattern:$0x75643120] }
  0x72   :  { %75 = vrot.lane.b32.xlu1 %v73_v4, %s235_s15  ;;  %153 = vrot.lane.b32.xlu2 %v151_v15, %s240_s18 }
  0x7a   :  { %91 = vrot.lane.b32.xlu2 %v89_v6, %s236_s16 }
  0x7c   :  { %v50_v16 = vpop.permute.xlu0 %49 }
  0x7d   :  { %53 = vst.msk [vmem:[#allocation2] sm:$0x3] %vm52_vm4, %v50_v16  ;;  %vm131_vm4 = vcmask 109570  }
  0x84   :  { %v84_v18 = vpop.permute.xlu2 %83 }
  0x85   :  { %87 = vst.msk [vmem:[#allocation2 + $0x4] sm:$0x3] %vm86_vm10, %v84_v18  ;;  %vm78_vm10 = vcmask 257170  }
  0x8c   :  { %v67_v17 = vpop.permute.xlu1 %66 }
  0x8d   :  { %70 = vst.msk [vmem:[#allocation2] sm:$0xc] %vm69_vm7, %v67_v17  ;;  %vm94_vm7 = vcmask 255112  }
  0xbc   :  { %v112_v19 = vpop.permute.xlu0 %111  ;;  %v138_v20 = vpop.permute.xlu2 %137 }
  0xbd   :  { %115 = vst.msk [vmem:[#allocation2 + $0x8] sm:$0x3] %vm114_vm15, %v112_v19 }
  0xc4   :  { %v120_v21 = vpop.permute.xlu1 %119 }
  0xc5   :  { %123 = vst.msk [vmem:[#allocation2 + $0x8] sm:$0x3] %vm122_vm1, %v120_v21 }
  0xcc   :  { %v129_v22 = vpop.permute.xlu0 %128  ;;  %v154_v23 = vpop.permute.xlu2 %153 }
  0xcd   :  { %132 = vst.msk [vmem:[#allocation2 + $0x8] sm:$0xc] %vm131_vm4, %v129_v22 }
  0xce   :  { %141 = vst.msk [vmem:[#allocation2 + $0x8] sm:$0xc] %vm140_vm5, %v138_v20 }
  0xd4   :  { %v58_v24 = vpop.permute.xlu0 %57  ;;  %v92_v25 = vpop.permute.xlu2 %91 }
  0xd5   :  { %61 = vst.msk [vmem:[#allocation2] sm:$0x3] %vm60_vm6, %v58_v24 }
  0xd6   :  { %95 = vst.msk [vmem:[#allocation2 + $0x4] sm:$0x3] %vm94_vm7, %v92_v25 }
  0xdc   :  { %v146_v26 = vpop.permute.xlu1 %145 }
  0xdd   :  { %149 = vst.msk [vmem:[#allocation2 + $0xc] sm:$0x3] %vm148_vm8, %v146_v26 }
  0xde   :  { %157 = vst.msk [vmem:[#allocation2 + $0xc] sm:$0x3] %vm156_vm9, %v154_v23 }
  0xe4   :  { %v76_v27 = vpop.permute.xlu1 %75 }
  0xe5   :  { %79 = vst.msk [vmem:[#allocation2] sm:$0xc] %vm78_vm10, %v76_v27  ;;  %v226_v28 = vld [vmem:[#allocation2 + $0x8] sm:$0xff] }
  0xe6   :  { %185 = vmatpush.bf16.msra.mxu0 %v226_v28 }
  0xec   :  { %v225_v29 = vld [vmem:[#allocation2] sm:$0xff] }
  0xed   :  { %186 = vmatpush.bf16.msra.mxu0 %v225_v29 }
  0xf0   :  { %224 = vmatmul.msk.bf16.vlgmr.msra.gmra.mxu0 %vm175_vm11, %v158_v30 }
 0x16d   :  { %v188_v31 = vpop.f32.mrf.mxu0 }
 0x16e   :  { %v192_v32 = vpack.c.bf16 %v188_v31, %v188_v31  ;;  %v195_v33 = vsel %vm175_vm11, %v188_v31, 0.0 }
 0x16f   :  { %196 = vadd.xlane.f32.xlu0 %v195_v33 }
 0x170   :  { %194 = vst.msk [vmem:[%s287_s2] sm:$0xf] %vm193_vm12, %v192_v32 }
 0x175   :  { %v190_v34 = vpop.f32.mrf.mxu0 }
 0x1e2   :  { %v197_v35 = vpop.xlane.xlu0 %196 }
 0x1e3   :  { %v198_v36 = vmul.f32 0.03125, %v197_v35 }
 0x1e5   :  { %v199_v37 = vsub.f32 %v188_v31, %v198_v36 }
 0x1e7   :  { %v200_v38 = vmul.f32 %v199_v37, %v199_v37 }
 0x1e9   :  { %v201_v39 = vsel %vm175_vm11, %v200_v38, 0.0 }
 0x1ea   :  { %202 = vadd.xlane.f32.xlu1 %v201_v39 }
 0x25d   :  { %v203_v40 = vpop.xlane.xlu1 %202 }
 0x25e   :  { %v205_v41 = vsel %vm204_vm13, %v197_v35, %v203_v40 }
 0x25f   :  { %207 = vst.msk [vmem:[%s288_s3] sm:$0xff] %vm206_vm14, %v205_v41 }

// kernel: double_conv_pallas.4
= control target key start
LH: loop header
LB: loop body
LE: loop exit
PB: predicated region body
PF: predicated region fallthrough
CT: control target
= control target key end

     0   :  { %v219_v0 = vmov 0   ;;  %vm42_vm0 = vcmask 126064   ;;  %vm44_vm1 = vcmask 257264   ;;  %vm90_vm2 = vcmask 125952   ;;  %s223_s24 = smov 1   ;;  %s224_s25 = smov 127   ;;  %s290_s1 = inlined_call_operand.vmem [shape: f32[8,1], index: 1, kind: input, shape index: {}]   ;;  %s291_s2 = inlined_call_operand.vmem [shape: f32[8,1], index: 2, kind: input, shape index: {}]   ;;  %s292_s0 = inlined_call_operand.vmem [shape: bf16[8,32], index: 0, kind: input, shape index: {}]   ;;  %s293_s3 = inlined_call_operand.vmem [shape: bf16[8,64], index: 3, kind: input, shape index: {}]   ;;  %s294_s4 = inlined_call_operand.vmem [shape: bf16[8,32], index: 4, kind: output, shape index: {0}]   ;;  %s295_s5 = inlined_call_operand.vmem [shape: f32[1,8,2], index: 5, kind: output, shape index: {1}]  }
   0x1   :  { %218 = vset.pattern.permute.xlu0 %v219_v0  ;;  %v52_v1 = vld [vmem:[%s290_s1] sm:$0xff]  ;;  %43 = vst.msk [vmem:[#allocation2 + $0x14] sm:$0xf] %vm42_vm0, %v219_v0  ;;  %vm92_vm3 = vcmask 257152   ;;  %s220_s1 = smov 3   ;;  %s225_s26 = smov 2  }
   0x2   :  { %55 = vperm.xlu0 %218, %v52_v1   ;;  %v59_v2 = vld [vmem:[%s291_s2] sm:$0xff]  ;;  %45 = vst.msk [vmem:[#allocation2 + $0x14] sm:$0xf] %vm44_vm1, %v219_v0  ;;  %s221_s2 = smov 126   ;;  %vm34_vm4 = vcmask 3072   ;;  %vm36_vm5 = vcmask 134272  }
   0x3   :  { %v50_v4 = vld [vmem:[%s292_s0] sm:$0xf]  ;;  %s222_s0 = smov 125   ;;  %35 = vst.msk [vmem:[#allocation2 + $0x8] sm:$0xf] %vm34_vm4, %v219_v0  ;;  %vm26_vm6 = vcmask 19456  }
   0x4   :  { %v51_v5 = vunpack.c.l.bf16 %v50_v4  ;;  %37 = vst.msk [vmem:[#allocation2 + $0x8] sm:$0xf] %vm36_vm5, %v219_v0  ;;  %vm28_vm7 = vcmask 150656   ;;  %vm46_vm8 = vcmask 126056   ;;  %vm48_vm9 = vcmask 257256  }
   0x5   :  { %27 = vst.msk [vmem:[#allocation2] sm:$0xf] %vm26_vm6, %v219_v0  ;;  %vm24_vm10 = vcmask 257024   ;;  %vm38_vm11 = vcmask 126072   ;;  %vm40_vm12 = vcmask 257272   ;;  %vm104_vm13 = vcmask 109568  }
   0x6   :  { %29 = vst.msk [vmem:[#allocation2] sm:$0xf] %vm28_vm7, %v219_v0  ;;  %vm106_vm14 = vcmask 240768   ;;  %vm30_vm15 = vcmask 11264   ;;  %vm32_vm0 = vcmask 142464   ;;  %vm86_vm1 = vcmask 125960  }
   0x7   :  { %47 = vst.msk [vmem:[#allocation2 + $0x18] sm:$0xf] %vm46_vm8, %v219_v0  ;;  %vm74_vm4 = vcmask 257176   ;;  %vm111_vm5 = vcmask 101376   ;;  %vm113_vm6 = vcmask 232576   ;;  %vm97_vm7 = vcmask 117760  }
   0x8   :  { %49 = vst.msk [vmem:[#allocation2 + $0x18] sm:$0xf] %vm48_vm9, %v219_v0  ;;  %vm99_vm8 = vcmask 248960   ;;  %vm79_vm9 = vcmask 125968   ;;  %v115_v21 = vld [vmem:[%s293_s3] sm:$0xf] }
   0x9   :  { %25 = vst.msk [vmem:[#allocation2 + $0x1c] sm:$0xf] %vm24_vm10, %v219_v0 }
   0xa   :  { %62 = vperm.xlu0 %218, %v59_v2   ;;  %39 = vst.msk [vmem:[#allocation2 + $0x10] sm:$0xf] %vm38_vm11, %v219_v0  ;;  %vm81_vm11 = vcmask 257168  }
   0xb   :  { %41 = vst.msk [vmem:[#allocation2 + $0x10] sm:$0xf] %vm40_vm12, %v219_v0  ;;  %vm148_vm12 = vcmask 523264  }
   0xc   :  { %31 = vst.msk [vmem:[#allocation2 + $0x4] sm:$0xf] %vm30_vm15, %v219_v0  ;;  %vm180_vm15 = vcmask 15360  }
   0xd   :  { %33 = vst.msk [vmem:[#allocation2 + $0x4] sm:$0xf] %vm32_vm0, %v219_v0 }
  0x74   :  { %v56_v3 = vpop.permute.xlu0 %55 }
  0x75   :  { %v58_v6 = vmul.f32 %v56_v3, %v51_v5 }
  0x7c   :  { %v63_v7 = vpop.permute.xlu0 %62 }
  0x7d   :  { %v65_v8 = vadd.f32 %v63_v7, %v58_v6 }
  0x7f   :  { %v66_v9 = vmax.f32 %v65_v8, 0.0 }
  0x81   :  { %v67_v10 = vpack.c.bf16 %v66_v9, %v66_v9 }
  0x83   :  { %91 = vst.msk [vmem:[#allocation2 + $0xc] sm:$0xf] %vm90_vm2, %v67_v10  ;;  %69 = vrot.lane.b32.xlu0 %v67_v10, %s220_s1  ;;  %101 = vrot.lane.b32.xlu2 %v67_v10, %s221_s2  ;;  %vm88_vm2 = vcmask 257160  }
  0x84   :  { %93 = vst.msk [vmem:[#allocation2 + $0xc] sm:$0xf] %vm92_vm3, %v67_v10  ;;  %108 = vrot.lane.b32.xlu1 %v67_v10, %s222_s0  ;;  %vm72_vm3 = vcmask 125976  }
  0x8b   :  { %83 = vrot.lane.b32.xlu2 %v67_v10, %s223_s24 }
  0x8c   :  { %94 = vrot.lane.b32.xlu1 %v67_v10, %s224_s25 }
  0x94   :  { %76 = vrot.lane.b32.xlu1 %v67_v10, %s225_s26 }
  0xdd   :  { %v102_v11 = vpop.permute.xlu2 %101 }
  0xde   :  { %105 = vst.msk [vmem:[#allocation2 + $0x14] sm:$0xf] %vm104_vm13, %v102_v11  ;;  %vm168_vm13 = vcmask 261120  }
  0xdf   :  { %107 = vst.msk [vmem:[#allocation2 + $0x14] sm:$0xf] %vm106_vm14, %v102_v11  ;;  %vm178_vm14 = vcmask 7168  }
  0xe5   :  { %v84_v12 = vpop.permute.xlu2 %83 }
  0xe6   :  { %87 = vst.msk [vmem:[#allocation2 + $0x8] sm:$0xf] %vm86_vm1, %v84_v12 }
  0xe7   :  { %89 = vst.msk [vmem:[#allocation2 + $0x8] sm:$0xf] %vm88_vm2, %v84_v12 }
  0xee   :  { %v208_v19 = vld [vmem:[#allocation2 + $0x8] sm:$0xff] }
  0xf5   :  { %v70_v13 = vpop.permute.xlu0 %69 }
  0xf6   :  { %73 = vst.msk [vmem:[#allocation2] sm:$0xf] %vm72_vm3, %v70_v13  ;;  %v109_v14 = vpop.permute.xlu1 %108 }
  0xf7   :  { %75 = vst.msk [vmem:[#allocation2] sm:$0xf] %vm74_vm4, %v70_v13 }
  0xf8   :  { %112 = vst.msk [vmem:[#allocation2 + $0x18] sm:$0xf] %vm111_vm5, %v109_v14 }
  0xf9   :  { %114 = vst.msk [vmem:[#allocation2 + $0x18] sm:$0xf] %vm113_vm6, %v109_v14 }
  0xfe   :  { %v95_v15 = vpop.permute.xlu1 %94 }
  0xff   :  { %98 = vst.msk [vmem:[#allocation2 + $0x10] sm:$0xf] %vm97_vm7, %v95_v15 }
 0x100   :  { %100 = vst.msk [vmem:[#allocation2 + $0x10] sm:$0xf] %vm99_vm8, %v95_v15  ;;  %v210_v16 = vld [vmem:[#allocation2 + $0x18] sm:$0xff] }
 0x101   :  { %156 = vmatpush.bf16.msra.mxu0 %v210_v16 }
 0x106   :  { %v77_v17 = vpop.permute.xlu1 %76 }
 0x107   :  { %80 = vst.msk [vmem:[#allocation2 + $0x4] sm:$0xf] %vm79_vm9, %v77_v17  ;;  %v209_v18 = vld [vmem:[#allocation2 + $0x10] sm:$0xff] }
 0x108   :  { %82 = vst.msk [vmem:[#allocation2 + $0x4] sm:$0xf] %vm81_vm11, %v77_v17  ;;  %157 = vmatpush.bf16.msra.mxu0 %v209_v18 }
 0x10c   :  { %158 = vmatpush.bf16.msra.mxu0 %v208_v19 }
 0x10f   :  { %v207_v20 = vld [vmem:[#allocation2] sm:$0xff] }
 0x110   :  { %159 = vmatpush.bf16.msra.mxu0 %v207_v20 }
 0x113   :  { %206 = vmatmul.msk.bf16.vlgmr.msra.gmra.mxu0 %vm148_vm12, %v115_v21 }
 0x190   :  { %v161_v22 = vpop.f32.mrf.mxu0 }
 0x191   :  { %v165_v23 = vpack.c.bf16 %v161_v22, %v161_v22  ;;  %v169_v24 = vsel %vm168_vm13, %v161_v22, 0.0 }
 0x192   :  { %170 = vadd.xlane.f32.xlu2 %v169_v24 }
 0x193   :  { %167 = vst.msk [vmem:[%s294_s4] sm:$0xf] %vm24_vm10, %v165_v23 }
 0x198   :  { %v163_v25 = vpop.f32.mrf.mxu0 }
 0x205   :  { %v171_v26 = vpop.xlane.xlu2 %170 }
 0x206   :  { %v172_v27 = vmul.f32 0.03125, %v171_v26 }
 0x208   :  { %v173_v28 = vsub.f32 %v161_v22, %v172_v27 }
 0x20a   :  { %v174_v29 = vmul.f32 %v173_v28, %v173_v28 }
 0x20c   :  { %v175_v30 = vsel %vm168_vm13, %v174_v29, 0.0 }
 0x20d   :  { %176 = vadd.xlane.f32.xlu0 %v175_v30 }
 0x280   :  { %v177_v31 = vpop.xlane.xlu0 %176 }
 0x281   :  { %v179_v32 = vsel %vm178_vm14, %v171_v26, %v177_v31 }
 0x282   :  { %181 = vst.msk [vmem:[%s295_s5] sm:$0xff] %vm180_vm15, %v179_v32 }

</bundles_post_ra>
